<compile_context>
chip_gen: v5e
topology: v5e:2x2
jax: 0.10.0
libtpu: 0.0.40
codegen_flags: <defaults>
</compile_context>

<pallas_src>
import jax
import jax.numpy as jnp
from jax.experimental import pallas as pl
from jax.experimental.pallas import tpu as pltpu


def _retrieval_kernel(obs_ref, act_ref,
                      w1o_ref, w1a_ref, b1_ref,
                      w2_ref, b2_ref,
                      w3_ref, b3_ref,
                      w4_ref, b4_ref,
                      out_ref):
    # Layer 1: the torch.cat is fused as a split-K matmul over obs / act.
    obs = obs_ref[...].astype(jnp.bfloat16)
    act = act_ref[...].astype(jnp.bfloat16)
    h = (jnp.dot(obs, w1o_ref[...], preferred_element_type=jnp.float32)
         + jnp.dot(act, w1a_ref[...], preferred_element_type=jnp.float32)
         + b1_ref[...])
    h = jnp.maximum(h, 0.0)

    h = jnp.dot(h.astype(jnp.bfloat16), w2_ref[...],
                preferred_element_type=jnp.float32) + b2_ref[...]
    h = jnp.maximum(h, 0.0)

    h = jnp.dot(h.astype(jnp.bfloat16), w3_ref[...],
                preferred_element_type=jnp.float32) + b3_ref[...]
    h = jnp.maximum(h, 0.0)

    q = jnp.dot(h.astype(jnp.bfloat16), w4_ref[...],
                preferred_element_type=jnp.float32) + b4_ref[...]
    # Narrow (tm, out_dim) store -- masked vst on 12/128 lanes, hidden under
    # the MXU work; avoids writing 128-lane f32 padding to HBM.
    out_ref[...] = q.astype(out_ref.dtype)


def _round_up(x, m):
    return ((x + m - 1) // m) * m


def prepare_params(params, obs_dim):
    """One-time parameter prep: bf16 weights (native MXU input rate, half the
    weight DMA bytes), f32 biases, w1 split for the fused concat."""
    w1 = params["w1"].astype(jnp.bfloat16)
    return {
        "w1o": w1[:obs_dim], "w1a": w1[obs_dim:],
        "b1": params["b1"].astype(jnp.float32),
        "w2": params["w2"].astype(jnp.bfloat16),
        "b2": params["b2"].astype(jnp.float32),
        "w3": params["w3"].astype(jnp.bfloat16),
        "b3": params["b3"].astype(jnp.float32),
        "w4": params["w4"].astype(jnp.bfloat16),
        "b4": params["b4"].astype(jnp.float32),
    }


def retrieval_forward(observations, actions, prepared, *, batch_tile=1024):
    """Pallas forward pass of the Retrieval module.

    observations: [B, obs_dim] float32
    actions:      [B, action_dim] float32
    prepared:     output of prepare_params()
    returns:      [B, obs_dim] float32
    """
    B, obs_dim = observations.shape
    act_dim = actions.shape[1]
    hidden = prepared["w2"].shape[0]
    out_dim = prepared["w4"].shape[1]          # == obs_dim

    # Batch tile: multiple of 16 sublanes (bf16 packing), clamped for small
    # batches; for big batches keep >= 2 grid steps so both v7x TensorCores
    # get work under dimension_semantics=("parallel",).
    b16 = _round_up(B, 16)
    tm = min(batch_tile, b16)
    if b16 >= 32 and b16 // tm < 2:
        tm = _round_up((b16 + 1) // 2, 16)
    B_pad = _round_up(B, tm)
    if B_pad != B:
        observations = jnp.pad(observations, ((0, B_pad - B), (0, 0)))
        actions = jnp.pad(actions, ((0, B_pad - B), (0, 0)))

    def const_spec(shape):
        # Full array as a single block, resident across the (batch) grid.
        return pl.BlockSpec(shape, lambda i: (0, 0))

    # Big tiles need headroom above v5e's 16 MiB scoped-VMEM default.
    vmem_limit = 48 * 1024 * 1024 if tm >= 1024 else None

    out = pl.pallas_call(
        _retrieval_kernel,
        out_shape=jax.ShapeDtypeStruct((B_pad, out_dim), jnp.float32),
        grid_spec=pltpu.PrefetchScalarGridSpec(
            num_scalar_prefetch=0,
            grid=(B_pad // tm,),
            in_specs=[
                pl.BlockSpec((tm, obs_dim), lambda i: (i, 0)),   # obs tile
                pl.BlockSpec((tm, act_dim), lambda i: (i, 0)),   # act tile
                const_spec((obs_dim, hidden)),
                const_spec((act_dim, hidden)),
                const_spec((1, hidden)),
                const_spec((hidden, hidden)), const_spec((1, hidden)),
                const_spec((hidden, hidden)), const_spec((1, hidden)),
                const_spec((hidden, out_dim)), const_spec((1, out_dim)),
            ],
            out_specs=pl.BlockSpec((tm, out_dim), lambda i: (i, 0)),
        ),
        compiler_params=pltpu.CompilerParams(
            dimension_semantics=("parallel",),
            vmem_limit_bytes=vmem_limit),
    )(observations, actions,
      prepared["w1o"], prepared["w1a"], prepared["b1"],
      prepared["w2"], prepared["b2"],
      prepared["w3"], prepared["b3"],
      prepared["w4"], prepared["b4"])

    return out[:B] if B_pad != B else out


def init_params(key, obs_dim, action_dim, hidden=256):
    """Deterministic synthetic init. Weights stored as [in, out], biases [1, out]."""
    in_dim = obs_dim + action_dim
    dims = [(in_dim, hidden), (hidden, hidden), (hidden, hidden), (hidden, obs_dim)]
    params = {}
    for idx, (fan_in, fan_out) in enumerate(dims, start=1):
        key, kw, kb = jax.random.split(key, 3)
        bound = 1.0 / jnp.sqrt(fan_in)
        params[f"w{idx}"] = jax.random.uniform(
            kw, (fan_in, fan_out), jnp.float32, -bound, bound)
        params[f"b{idx}"] = jax.random.uniform(
            kb, (1, fan_out), jnp.float32, -bound, bound)
    return params


def retrieval_reference_f32(observations, actions, params):
    """Plain-JAX f32 reference matching the PyTorch forward."""
    x = jnp.concatenate([observations, actions], axis=-1)
    h = jax.nn.relu(x @ params["w1"] + params["b1"])
    h = jax.nn.relu(h @ params["w2"] + params["b2"])
    h = jax.nn.relu(h @ params["w3"] + params["b3"])
    return h @ params["w4"] + params["b4"]


def retrieval_reference_bf16(observations, actions, params):
    """Reference mirroring the kernel's bf16-input / f32-accumulate matmuls."""
    def mm(a, w):
        return jnp.dot(a.astype(jnp.bfloat16), w.astype(jnp.bfloat16),
                       preferred_element_type=jnp.float32)
    x = jnp.concatenate([observations, actions], axis=-1)
    h = jax.nn.relu(mm(x, params["w1"]) + params["b1"])
    h = jax.nn.relu(mm(h, params["w2"]) + params["b2"])
    h = jax.nn.relu(mm(h, params["w3"]) + params["b3"])
    return mm(h, params["w4"]) + params["b4"]


if __name__ == "__main__":
    obs_dim, action_dim = 12, 4
    batch = 10  # deliberately not a multiple of 16 (exercises tile clamp + pad)

    key = jax.random.PRNGKey(0)
    key, ko, ka, kp = jax.random.split(key, 4)
    observations = jax.random.normal(ko, (batch, obs_dim), jnp.float32)
    actions = jax.random.normal(ka, (batch, action_dim), jnp.float32)
    params = init_params(kp, obs_dim, action_dim)

    prepared = prepare_params(params, obs_dim)   # hoisted one-time weight prep
    out = retrieval_forward(observations, actions, prepared)
    out = jax.block_until_ready(out)
    assert out.shape == (batch, obs_dim)

    ref_bf16 = retrieval_reference_bf16(observations, actions, params)
    ref_f32 = retrieval_reference_f32(observations, actions, params)
    assert jnp.allclose(out, ref_bf16, atol=1e-2, rtol=1e-2), "mismatch vs bf16 reference"
    assert jnp.allclose(out, ref_f32, atol=5e-2, rtol=5e-2), "mismatch vs f32 reference"

    print("KERNEL_OK")
</pallas_src>

<mosaic_0001>
module attributes {stable_mosaic.version = 11 : i64} {
  func.func @_retrieval_kernel(%arg0: i32, %arg1: memref<16x12xf32, #tpu.memory_space<vmem>>, %arg2: memref<16x4xf32, #tpu.memory_space<vmem>>, %arg3: memref<12x256xbf16, #tpu.memory_space<vmem>>, %arg4: memref<4x256xbf16, #tpu.memory_space<vmem>>, %arg5: memref<1x256xf32, #tpu.memory_space<vmem>>, %arg6: memref<256x256xbf16, #tpu.memory_space<vmem>>, %arg7: memref<1x256xf32, #tpu.memory_space<vmem>>, %arg8: memref<256x256xbf16, #tpu.memory_space<vmem>>, %arg9: memref<1x256xf32, #tpu.memory_space<vmem>>, %arg10: memref<256x12xbf16, #tpu.memory_space<vmem>>, %arg11: memref<1x12xf32, #tpu.memory_space<vmem>>, %arg12: memref<16x12xf32, #tpu.memory_space<vmem>>) attributes {dimension_semantics = [#tpu.dimension_semantics<parallel>], iteration_bounds = array<i64: 1>, scalar_prefetch = 0 : i64, scratch_operands = 0 : i64, tpu.core_type = #tpu.core_type<tc>, window_params = [{transform_indices = @transform_0, window_bounds = array<i64: 16, 12>}, {transform_indices = @transform_1, window_bounds = array<i64: 16, 4>}, {pipeline_mode = #tpu.pipeline_mode<synchronous>, transform_indices = @transform_2, window_bounds = array<i64: 12, 256>}, {pipeline_mode = #tpu.pipeline_mode<synchronous>, transform_indices = @transform_3, window_bounds = array<i64: 4, 256>}, {pipeline_mode = #tpu.pipeline_mode<synchronous>, transform_indices = @transform_4, window_bounds = array<i64: 1, 256>}, {pipeline_mode = #tpu.pipeline_mode<synchronous>, transform_indices = @transform_5, window_bounds = array<i64: 256, 256>}, {pipeline_mode = #tpu.pipeline_mode<synchronous>, transform_indices = @transform_6, window_bounds = array<i64: 1, 256>}, {pipeline_mode = #tpu.pipeline_mode<synchronous>, transform_indices = @transform_7, window_bounds = array<i64: 256, 256>}, {pipeline_mode = #tpu.pipeline_mode<synchronous>, transform_indices = @transform_8, window_bounds = array<i64: 1, 256>}, {pipeline_mode = #tpu.pipeline_mode<synchronous>, transform_indices = @transform_9, window_bounds = array<i64: 256, 12>}, {pipeline_mode = #tpu.pipeline_mode<synchronous>, transform_indices = @transform_10, window_bounds = array<i64: 1, 12>}, {transform_indices = @transform_11, window_bounds = array<i64: 16, 12>}]} {
    %c0 = arith.constant 0 : index
    %c0_0 = arith.constant 0 : index
    %0 = vector.load %arg1[%c0, %c0_0] : memref<16x12xf32, #tpu.memory_space<vmem>>, vector<16x12xf32>
    %1 = arith.truncf %0 : vector<16x12xf32> to vector<16x12xbf16>
    %c0_1 = arith.constant 0 : index
    %c0_2 = arith.constant 0 : index
    %2 = vector.load %arg2[%c0_1, %c0_2] : memref<16x4xf32, #tpu.memory_space<vmem>>, vector<16x4xf32>
    %3 = arith.truncf %2 : vector<16x4xf32> to vector<16x4xbf16>
    %c0_3 = arith.constant 0 : index
    %c0_4 = arith.constant 0 : index
    %4 = vector.load %arg3[%c0_3, %c0_4] : memref<12x256xbf16, #tpu.memory_space<vmem>>, vector<12x256xbf16>
    %cst = arith.constant dense<0.000000e+00> : vector<16x256xf32>
    %5 = tpu.matmul %1, %4, %cst {dimension_numbers = #tpu.dot_dimension_numbers<[1], [0], [0], [1], [0, 0, 1, 1], [], []>} : vector<16x12xbf16>, vector<12x256xbf16>, vector<16x256xf32> -> vector<16x256xf32>
    %c0_5 = arith.constant 0 : index
    %c0_6 = arith.constant 0 : index
    %6 = vector.load %arg4[%c0_5, %c0_6] : memref<4x256xbf16, #tpu.memory_space<vmem>>, vector<4x256xbf16>
    %cst_7 = arith.constant dense<0.000000e+00> : vector<16x256xf32>
    %7 = tpu.matmul %3, %6, %cst_7 {dimension_numbers = #tpu.dot_dimension_numbers<[1], [0], [0], [1], [0, 0, 1, 1], [], []>} : vector<16x4xbf16>, vector<4x256xbf16>, vector<16x256xf32> -> vector<16x256xf32>
    %8 = arith.addf %5, %7 : vector<16x256xf32>
    %c0_8 = arith.constant 0 : index
    %c0_9 = arith.constant 0 : index
    %9 = vector.load %arg5[%c0_8, %c0_9] : memref<1x256xf32, #tpu.memory_space<vmem>>, vector<1x256xf32>
    %10 = vector.broadcast %9 : vector<1x256xf32> to vector<16x256xf32>
    %11 = arith.addf %8, %10 : vector<16x256xf32>
    %cst_10 = arith.constant 0.000000e+00 : f32
    %12 = vector.broadcast %cst_10 : f32 to vector<16x256xf32>
    %13 = arith.maximumf %11, %12 : vector<16x256xf32>
    %14 = arith.truncf %13 : vector<16x256xf32> to vector<16x256xbf16>
    %c0_11 = arith.constant 0 : index
    %c0_12 = arith.constant 0 : index
    %15 = vector.load %arg6[%c0_11, %c0_12] : memref<256x256xbf16, #tpu.memory_space<vmem>>, vector<256x256xbf16>
    %cst_13 = arith.constant dense<0.000000e+00> : vector<16x256xf32>
    %16 = tpu.matmul %14, %15, %cst_13 {dimension_numbers = #tpu.dot_dimension_numbers<[1], [0], [0], [1], [0, 0, 1, 1], [], []>} : vector<16x256xbf16>, vector<256x256xbf16>, vector<16x256xf32> -> vector<16x256xf32>
    %c0_14 = arith.constant 0 : index
    %c0_15 = arith.constant 0 : index
    %17 = vector.load %arg7[%c0_14, %c0_15] : memref<1x256xf32, #tpu.memory_space<vmem>>, vector<1x256xf32>
    %18 = vector.broadcast %17 : vector<1x256xf32> to vector<16x256xf32>
    %19 = arith.addf %16, %18 : vector<16x256xf32>
    %cst_16 = arith.constant 0.000000e+00 : f32
    %20 = vector.broadcast %cst_16 : f32 to vector<16x256xf32>
    %21 = arith.maximumf %19, %20 : vector<16x256xf32>
    %22 = arith.truncf %21 : vector<16x256xf32> to vector<16x256xbf16>
    %c0_17 = arith.constant 0 : index
    %c0_18 = arith.constant 0 : index
    %23 = vector.load %arg8[%c0_17, %c0_18] : memref<256x256xbf16, #tpu.memory_space<vmem>>, vector<256x256xbf16>
    %cst_19 = arith.constant dense<0.000000e+00> : vector<16x256xf32>
    %24 = tpu.matmul %22, %23, %cst_19 {dimension_numbers = #tpu.dot_dimension_numbers<[1], [0], [0], [1], [0, 0, 1, 1], [], []>} : vector<16x256xbf16>, vector<256x256xbf16>, vector<16x256xf32> -> vector<16x256xf32>
    %c0_20 = arith.constant 0 : index
    %c0_21 = arith.constant 0 : index
    %25 = vector.load %arg9[%c0_20, %c0_21] : memref<1x256xf32, #tpu.memory_space<vmem>>, vector<1x256xf32>
    %26 = vector.broadcast %25 : vector<1x256xf32> to vector<16x256xf32>
    %27 = arith.addf %24, %26 : vector<16x256xf32>
    %cst_22 = arith.constant 0.000000e+00 : f32
    %28 = vector.broadcast %cst_22 : f32 to vector<16x256xf32>
    %29 = arith.maximumf %27, %28 : vector<16x256xf32>
    %30 = arith.truncf %29 : vector<16x256xf32> to vector<16x256xbf16>
    %c0_23 = arith.constant 0 : index
    %c0_24 = arith.constant 0 : index
    %31 = vector.load %arg10[%c0_23, %c0_24] : memref<256x12xbf16, #tpu.memory_space<vmem>>, vector<256x12xbf16>
    %cst_25 = arith.constant dense<0.000000e+00> : vector<16x12xf32>
    %32 = tpu.matmul %30, %31, %cst_25 {dimension_numbers = #tpu.dot_dimension_numbers<[1], [0], [0], [1], [0, 0, 1, 1], [], []>} : vector<16x256xbf16>, vector<256x12xbf16>, vector<16x12xf32> -> vector<16x12xf32>
    %c0_26 = arith.constant 0 : index
    %c0_27 = arith.constant 0 : index
    %33 = vector.load %arg11[%c0_26, %c0_27] : memref<1x12xf32, #tpu.memory_space<vmem>>, vector<1x12xf32>
    %34 = vector.broadcast %33 : vector<1x12xf32> to vector<16x12xf32>
    %35 = arith.addf %32, %34 : vector<16x12xf32>
    %c0_28 = arith.constant 0 : index
    %c0_29 = arith.constant 0 : index
    %36 = vector.load %arg12[%c0_28, %c0_29] : memref<16x12xf32, #tpu.memory_space<vmem>>, vector<16x12xf32>
    tpu.vector_store %arg12[%c0_28, %c0_29], %35 {strides = array<i32>} : memref<16x12xf32, #tpu.memory_space<vmem>>, vector<16x12xf32>,
    return
  }
  func.func @transform_0(%arg0: i32) -> (i32, i32) {
    %c0_i32 = arith.constant 0 : i32
    %c0_i32_0 = arith.constant 0 : i32
    return %arg0, %c0_i32 : i32, i32
  }
  func.func @transform_1(%arg0: i32) -> (i32, i32) {
    %c0_i32 = arith.constant 0 : i32
    %c0_i32_0 = arith.constant 0 : i32
    return %arg0, %c0_i32 : i32, i32
  }
  func.func @transform_2(%arg0: i32) -> (i32, i32) {
    %c0_i32 = arith.constant 0 : i32
    %c0_i32_0 = arith.constant 0 : i32
    %c0_i32_1 = arith.constant 0 : i32
    return %c0_i32, %c0_i32_0 : i32, i32
  }
  func.func @transform_3(%arg0: i32) -> (i32, i32) {
    %c0_i32 = arith.constant 0 : i32
    %c0_i32_0 = arith.constant 0 : i32
    %c0_i32_1 = arith.constant 0 : i32
    return %c0_i32, %c0_i32_0 : i32, i32
  }
  func.func @transform_4(%arg0: i32) -> (i32, i32) {
    %c0_i32 = arith.constant 0 : i32
    %c0_i32_0 = arith.constant 0 : i32
    %c0_i32_1 = arith.constant 0 : i32
    return %c0_i32, %c0_i32_0 : i32, i32
  }
  func.func @transform_5(%arg0: i32) -> (i32, i32) {
    %c0_i32 = arith.constant 0 : i32
    %c0_i32_0 = arith.constant 0 : i32
    %c0_i32_1 = arith.constant 0 : i32
    return %c0_i32, %c0_i32_0 : i32, i32
  }
  func.func @transform_6(%arg0: i32) -> (i32, i32) {
    %c0_i32 = arith.constant 0 : i32
    %c0_i32_0 = arith.constant 0 : i32
    %c0_i32_1 = arith.constant 0 : i32
    return %c0_i32, %c0_i32_0 : i32, i32
  }
  func.func @transform_7(%arg0: i32) -> (i32, i32) {
    %c0_i32 = arith.constant 0 : i32
    %c0_i32_0 = arith.constant 0 : i32
    %c0_i32_1 = arith.constant 0 : i32
    return %c0_i32, %c0_i32_0 : i32, i32
  }
  func.func @transform_8(%arg0: i32) -> (i32, i32) {
    %c0_i32 = arith.constant 0 : i32
    %c0_i32_0 = arith.constant 0 : i32
    %c0_i32_1 = arith.constant 0 : i32
    return %c0_i32, %c0_i32_0 : i32, i32
  }
  func.func @transform_9(%arg0: i32) -> (i32, i32) {
    %c0_i32 = arith.constant 0 : i32
    %c0_i32_0 = arith.constant 0 : i32
    %c0_i32_1 = arith.constant 0 : i32
    return %c0_i32, %c0_i32_0 : i32, i32
  }
  func.func @transform_10(%arg0: i32) -> (i32, i32) {
    %c0_i32 = arith.constant 0 : i32
    %c0_i32_0 = arith.constant 0 : i32
    %c0_i32_1 = arith.constant 0 : i32
    return %c0_i32, %c0_i32_0 : i32, i32
  }
  func.func @transform_11(%arg0: i32) -> (i32, i32) {
    %c0_i32 = arith.constant 0 : i32
    %c0_i32_0 = arith.constant 0 : i32
    return %arg0, %c0_i32 : i32, i32
  }
}

</mosaic_0001>

<bundles_post_ra>
// kernel: tpu_custom_call.1
= control target key start
LH: loop header
LB: loop body
LE: loop exit
PB: predicated region body
PF: predicated region fallthrough
CT: control target
= control target key end

     0   :  { %16 = vsyncpa [#allocation3], 0  ;;  %s1559_s0 = inlined_call_operand.vmem [shape: f32[16,12], index: 0, kind: input, shape index: {}]   ;;  %s1560_s1 = inlined_call_operand.vmem [shape: f32[16,4], index: 1, kind: input, shape index: {}]   ;;  %s1561_s2 = inlined_call_operand.vmem [shape: bf16[12,256], index: 2, kind: input, shape index: {}]   ;;  %s1562_s3 = inlined_call_operand.vmem [shape: bf16[4,256], index: 3, kind: input, shape index: {}]   ;;  %s1563_s4 = inlined_call_operand.vmem [shape: f32[1,256], index: 4, kind: input, shape index: {}]   ;;  %s1564_s5 = inlined_call_operand.hbm [shape: bf16[256,256], index: 5, kind: input, shape index: {}]   ;;  %s1565_s6 = inlined_call_operand.vmem [shape: f32[1,256], index: 6, kind: input, shape index: {}]   ;;  %s1566_s7 = inlined_call_operand.hbm [shape: bf16[256,256], index: 7, kind: input, shape index: {}]   ;;  %s1567_s8 = inlined_call_operand.vmem [shape: f32[1,256], index: 8, kind: input, shape index: {}]   ;;  %s1568_s9 = inlined_call_operand.vmem [shape: bf16[256,12], index: 9, kind: input, shape index: {}]   ;;  %s1569_s10 = inlined_call_operand.vmem [shape: f32[1,12], index: 10, kind: input, shape index: {}]   ;;  %s1570_s11 = inlined_call_operand.hbm [shape: f32[16,12], index: 11, kind: output, shape index: {}]  }
   0x1   :  { %17 = vsyncpa [#allocation6], 0 }
   0x2   :  { %18 = vsyncpa [#allocation4], 0  ;;  %s33_s19 = sshll.u32 %s1564_s5, 4  ;;  %s1385_s20 = smov [#allocation2]   ;;  %s34_s19 = int_to_ptr.hbm [resolvable:$true] %s33_s19 }
   0x3   :  { %s35_s21 = sshll.u32 %s1385_s20, 4  ;;  %s48_s24 = sshll.u32 %s1566_s7, 4  ;;  %s36_s21 = int_to_ptr.vmem [resolvable:$true] %s35_s21  ;;  %s49_s24 = int_to_ptr.hbm [resolvable:$true] %s48_s24 }
   0x4   :  { %s1386_s25 = smov 128   ;;  %s1387_s26 = smov 8  }
   0x5   :  { %41 = dma.hbm_to_vmem [thread:$0]  %s34_s19, 4096, %s36_s21, [#allocation3], %s1386_s25, %s1386_s25, %s1387_s26  }
   0x6   :  { %s1388_s27 = smov [#allocation5]  }
   0x7   :  { %s50_s28 = sshll.u32 %s1388_s27, 4  ;;  %s51_s28 = int_to_ptr.vmem [resolvable:$true] %s50_s28 }
   0x8   :  { %56 = dma.hbm_to_vmem [thread:$0]  %s49_s24, 4096, %s51_s28, [#allocation6], %s1386_s25, %s1386_s25, %s1387_s26  }
   0x9   :  { %1379 = dma.done.wait [#allocation3], 4096  }
   0xa   :  { %1380 = vsyncadd [#allocation3], 4294963200 }
   0xb   :  { %1381 = dma.done.wait [#allocation6], 4096  }
   0xc   :  { %1382 = vsyncadd [#allocation6], 4294963200  ;;  %v80_v0 = vld [vmem:[%s1562_s3] sm:$0xf]  ;;  %v1220_v2 = vld [vmem:[%s1561_s2 + $0x4] sm:$0x30] }
   0xd   :  { %82 = vst [vmem:[#allocation1] ss:$4 sm:$0xff] %v80_v0  ;;  %v891_v1 = vld [vmem:[%s1561_s2] sm:$0xf]  ;;  %v1219_v3 = vld [vmem:[%s1561_s2 + $0x4] sm:$0xf] }
   0xe   :  { %v893_v4 = vld [vmem:[%s1561_s2 + $0x8] sm:$0x30]  ;;  %v892_v5 = vor.u32 %v1220_v2, %v891_v1  ;;  %vm134_vm0 = vcmask 1045504   ;;  %vm89_vm1 = vcmask 1041408   ;;  %v75_v7 = vld [vmem:[%s1560_s1] sm:$0xff]  ;;  %vm85_vm2 = vcmask 31744  }
   0xf   :  { %v896_v6 = vor.u32 %v1219_v3, %v893_v4  ;;  %v76_v8 = vld [vmem:[%s1560_s1 + $0x8] sm:$0xff]  ;;  %v72_v16 = vld [vmem:[%s1559_s0] sm:$0xff]  ;;  %vm130_vm3 = vcmask 97280   ;;  %v957_v19 = vld [vmem:[#allocation2 + $0x70] sm:$0xf]  ;;  %s1389_s14 = smov [#allocation7]  }
  0x10   :  { %v136_v9 = vsel %vm134_vm0, %v892_v5, 0  ;;  %v77_v15 = vpack.c.bf16 %v76_v8, %v75_v7  ;;  %v73_v17 = vld [vmem:[%s1559_s0 + $0x8] sm:$0xff]  ;;  %v1236_v20 = vld [vmem:[#allocation2 + $0x74] sm:$0xf0]  ;;  %v1021_v21 = vld [vmem:[#allocation2 + $0xf0] sm:$0xf] }
  0x11   :  { %v139_v10 = vsel %vm134_vm0, %v896_v6, 0  ;;  %v74_v18 = vpack.c.bf16 %v73_v17, %v72_v16  ;;  %v958_v22 = vor.u32 %v1236_v20, %v957_v19  ;;  %v1252_v23 = vld [vmem:[#allocation2 + $0xf4] sm:$0xf0]  ;;  %v1235_v24 = vld [vmem:[#allocation2 + $0x74] sm:$0xf]  ;;  %s871_s15 = sshll.u32 %s1389_s14, 4  ;;  %s872_s15 = int_to_ptr.vmem [resolvable:$true] %s871_s15 }
  0x12   :  { %v959_v25 = vld [vmem:[#allocation2 + $0x78] sm:$0xf0]  ;;  %v1022_v26 = vor.u32 %v1252_v23, %v1021_v21  ;;  %v1251_v28 = vld [vmem:[#allocation2 + $0xf4] sm:$0xf]  ;;  %v949_v30 = vld [vmem:[#allocation2 + $0x60] sm:$0xf] }
  0x13   :  { %v962_v27 = vor.u32 %v1235_v24, %v959_v25  ;;  %v1023_v29 = vld [vmem:[#allocation2 + $0xf8] sm:$0xf0]  ;;  %383 = vmatpush.bf16.msra.mxu0 %v958_v22  ;;  %v1234_v32 = vld [vmem:[#allocation2 + $0x64] sm:$0xf0]  ;;  %v1013_v33 = vld [vmem:[#allocation2 + $0xe0] sm:$0xf] }
  0x14   :  { %v83_v11 = vld.sshfl [vmem:[#allocation1] sm:$0xff pattern:$0x73625140]  ;;  %v84_v12 = vld.sshfl [vmem:[#allocation1 + $0x8] sm:$0xff pattern:$0x73625140]  ;;  %v1026_v31 = vor.u32 %v1251_v28, %v1023_v29  ;;  %397 = vmatpush.bf16.msra.mxu1 %v1022_v26  ;;  %v950_v35 = vor.u32 %v1234_v32, %v949_v30 }
  0x15   :  { %v90_v13 = vsel %vm89_vm1, %v83_v11, 0  ;;  %v92_v14 = vsel %vm89_vm1, %v84_v12, 0  ;;  %v1250_v34 = vld [vmem:[#allocation2 + $0xe4] sm:$0xf0]  ;;  %v1233_v37 = vld [vmem:[#allocation2 + $0x64] sm:$0xf] }
  0x16   :  { %101 = vmatpush.bf16.msra.mxu2 %v90_v13  ;;  %115 = vmatpush.bf16.msra.mxu3 %v92_v14  ;;  %v1014_v36 = vor.u32 %v1250_v34, %v1013_v33  ;;  %v951_v38 = vld [vmem:[#allocation2 + $0x68] sm:$0xf0]  ;;  %v1249_v39 = vld [vmem:[#allocation2 + $0xe4] sm:$0xf]  ;;  %v941_v43 = vld [vmem:[#allocation2 + $0x50] sm:$0xf] }
  0x17   :  { %v954_v40 = vor.u32 %v1233_v37, %v951_v38  ;;  %v1015_v41 = vld [vmem:[#allocation2 + $0xe8] sm:$0xf0]  ;;  %384 = vmatpush.bf16.msra.mxu0 %v950_v35  ;;  %v1232_v44 = vld [vmem:[#allocation2 + $0x54] sm:$0xf0]  ;;  %v1005_v45 = vld [vmem:[#allocation2 + $0xd0] sm:$0xf] }
  0x18   :  { %v1018_v42 = vor.u32 %v1249_v39, %v1015_v41  ;;  %398 = vmatpush.bf16.msra.mxu1 %v1014_v36  ;;  %v942_v46 = vor.u32 %v1232_v44, %v941_v43  ;;  %v1248_v47 = vld [vmem:[#allocation2 + $0xd4] sm:$0xf0]  ;;  %v1231_v48 = vld [vmem:[#allocation2 + $0x54] sm:$0xf]  ;;  %v943_v49 = vld [vmem:[#allocation2 + $0x58] sm:$0xf0] }
  0x19   :  { %887 = vmatmul.msk.bf16.vlgmr.msra.gmra.mxu2 %vm85_vm2, %v77_v15  ;;  %888 = vmatmul.msk.bf16.vlgmr.msra.gmra.mxu3 %vm85_vm2, %v77_v15  ;;  %v1006_v50 = vor.u32 %v1248_v47, %v1005_v45  ;;  %v946_v51 = vor.u32 %v1231_v48, %v943_v49  ;;  %v1247_v52 = vld [vmem:[#allocation2 + $0xd4] sm:$0xf]  ;;  %v1007_v53 = vld [vmem:[#allocation2 + $0xd8] sm:$0xf0]  ;;  %v933_v54 = vld [vmem:[#allocation2 + $0x40] sm:$0xf] }
  0x1a   :  { %148 = vmatpush.bf16.msrb.mxu2 %v136_v9  ;;  %162 = vmatpush.bf16.msrb.mxu3 %v139_v10  ;;  %v1010_v55 = vor.u32 %v1247_v52, %v1007_v53  ;;  %v1230_v56 = vld [vmem:[#allocation2 + $0x44] sm:$0xf0]  ;;  %v997_v57 = vld [vmem:[#allocation2 + $0xc0] sm:$0xf]  ;;  %v1229_v61 = vld [vmem:[#allocation2 + $0x44] sm:$0xf] }
  0x1b   :  { %385 = vmatpush.bf16.msra.mxu0 %v942_v46  ;;  %v1246_v58 = vld [vmem:[#allocation2 + $0xc4] sm:$0xf0]  ;;  %v934_v59 = vor.u32 %v1230_v56, %v933_v54  ;;  %v935_v62 = vld [vmem:[#allocation2 + $0x48] sm:$0xf0]  ;;  %v1245_v63 = vld [vmem:[#allocation2 + $0xc4] sm:$0xf] }
  0x1c   :  { %399 = vmatpush.bf16.msra.mxu1 %v1006_v50  ;;  %v998_v60 = vor.u32 %v1246_v58, %v997_v57  ;;  %v938_v0 = vor.u32 %v1229_v61, %v935_v62  ;;  %v999_v1 = vld [vmem:[#allocation2 + $0xc8] sm:$0xf0]  ;;  %v925_v3 = vld [vmem:[#allocation2 + $0x30] sm:$0xf]  ;;  %v1228_v4 = vld [vmem:[#allocation2 + $0x34] sm:$0xf0] }
  0x1d   :  { %v1002_v2 = vor.u32 %v1245_v63, %v999_v1  ;;  %v989_v5 = vld [vmem:[#allocation2 + $0xb0] sm:$0xf]  ;;  %v926_v6 = vor.u32 %v1228_v4, %v925_v3  ;;  %v1244_v7 = vld [vmem:[#allocation2 + $0xb4] sm:$0xf0]  ;;  %v1227_v8 = vld [vmem:[#allocation2 + $0x34] sm:$0xf] }
  0x1e   :  { %411 = vmatpush.bf16.msra.mxu2 %v962_v27  ;;  %425 = vmatpush.bf16.msra.mxu3 %v1026_v31  ;;  %v990_v9 = vor.u32 %v1244_v7, %v989_v5  ;;  %v927_v10 = vld [vmem:[#allocation2 + $0x38] sm:$0xf0]  ;;  %v1243_v11 = vld [vmem:[#allocation2 + $0xb4] sm:$0xf]  ;;  %v917_v15 = vld [vmem:[#allocation2 + $0x20] sm:$0xf] }
  0x1f   :  { %386 = vmatpush.bf16.msra.mxu0 %v934_v59  ;;  %v930_v12 = vor.u32 %v1227_v8, %v927_v10  ;;  %v991_v13 = vld [vmem:[#allocation2 + $0xb8] sm:$0xf0]  ;;  %v1226_v16 = vld [vmem:[#allocation2 + $0x24] sm:$0xf0]  ;;  %v981_v17 = vld [vmem:[#allocation2 + $0xa0] sm:$0xf] }
  0x20   :  { %400 = vmatpush.bf16.msra.mxu1 %v998_v60  ;;  %v994_v14 = vor.u32 %v1243_v11, %v991_v13  ;;  %v1242_v19 = vld [vmem:[#allocation2 + $0xa4] sm:$0xf0]  ;;  %v1225_v20 = vld [vmem:[#allocation2 + $0x24] sm:$0xf]  ;;  %v919_v21 = vld [vmem:[#allocation2 + $0x28] sm:$0xf0] }
  0x21   :  { %v982_v22 = vor.u32 %v1242_v19, %v981_v17  ;;  %v922_v23 = vor.u32 %v1225_v20, %v919_v21  ;;  %v1241_v24 = vld [vmem:[#allocation2 + $0xa4] sm:$0xf]  ;;  %v983_v25 = vld [vmem:[#allocation2 + $0xa8] sm:$0xf0]  ;;  %v909_v27 = vld [vmem:[#allocation2 + $0x10] sm:$0xf] }
  0x22   :  { %412 = vmatpush.bf16.msra.mxu2 %v954_v40  ;;  %426 = vmatpush.bf16.msra.mxu3 %v1018_v42  ;;  %v986_v26 = vor.u32 %v1241_v24, %v983_v25  ;;  %v1224_v28 = vld [vmem:[#allocation2 + $0x14] sm:$0xf0]  ;;  %v973_v29 = vld [vmem:[#allocation2 + $0x90] sm:$0xf]  ;;  %v1223_v32 = vld [vmem:[#allocation2 + $0x14] sm:$0xf] }
  0x23   :  { %387 = vmatpush.bf16.msra.mxu0 %v926_v6  ;;  %v910_v30 = vor.u32 %v1224_v28, %v909_v27  ;;  %v1240_v31 = vld [vmem:[#allocation2 + $0x94] sm:$0xf0]  ;;  %v911_v33 = vld [vmem:[#allocation2 + $0x18] sm:$0xf0]  ;;  %v1239_v36 = vld [vmem:[#allocation2 + $0x94] sm:$0xf] }
  0x24   :  { %401 = vmatpush.bf16.msra.mxu1 %v990_v9  ;;  %v974_v34 = vor.u32 %v1240_v31, %v973_v29  ;;  %v914_v35 = vor.u32 %v1223_v32, %v911_v33  ;;  %v975_v37 = vld [vmem:[#allocation2 + $0x98] sm:$0xf0]  ;;  %v901_v39 = vld [vmem:[#allocation2] sm:$0xf]  ;;  %v1222_v40 = vld [vmem:[#allocation2 + $0x4] sm:$0xf0] }
  0x25   :  { %v978_v38 = vor.u32 %v1239_v36, %v975_v37  ;;  %v965_v41 = vld [vmem:[#allocation2 + $0x80] sm:$0xf]  ;;  %v902_v42 = vor.u32 %v1222_v40, %v901_v39  ;;  %v1238_v43 = vld [vmem:[#allocation2 + $0x84] sm:$0xf0]  ;;  %v1221_v44 = vld [vmem:[#allocation2 + $0x4] sm:$0xf] }
  0x26   :  { %413 = vmatpush.bf16.msra.mxu2 %v946_v51  ;;  %427 = vmatpush.bf16.msra.mxu3 %v1010_v55  ;;  %v903_v45 = vld [vmem:[#allocation2 + $0x8] sm:$0xf0]  ;;  %v966_v46 = vor.u32 %v1238_v43, %v965_v41  ;;  %v1237_v48 = vld [vmem:[#allocation2 + $0x84] sm:$0xf]  ;;  %v1085_v53 = vld [vmem:[#allocation5 + $0x70] sm:$0xf] }
  0x27   :  { %v906_v47 = vor.u32 %v1221_v44, %v903_v45  ;;  %v967_v49 = vld [vmem:[#allocation2 + $0x88] sm:$0xf0]  ;;  %v1268_v54 = vld [vmem:[#allocation5 + $0x74] sm:$0xf0]  ;;  %v1267_v55 = vld [vmem:[#allocation5 + $0x74] sm:$0xf] }
  0x28   :  { %402 = vmatpush.bf16.msra.mxu1 %v982_v22  ;;  %v970_v50 = vor.u32 %v1237_v48, %v967_v49  ;;  %v1086_v56 = vor.u32 %v1268_v54, %v1085_v53  ;;  %v1087_v57 = vld [vmem:[#allocation5 + $0x78] sm:$0xf0]  ;;  %v1077_v58 = vld [vmem:[#allocation5 + $0x60] sm:$0xf]  ;;  %v1266_v59 = vld [vmem:[#allocation5 + $0x64] sm:$0xf0] }
  0x29   :  { %897 = vmatmul.msk.bf16.vlgmr.msrb.gmra.mxu2 %vm130_vm3, %v74_v18  ;;  %898 = vmatmul.msk.bf16.vlgmr.msrb.gmra.mxu3 %vm130_vm3, %v74_v18  ;;  %v918_v18 = vor.u32 %v1226_v16, %v917_v15  ;;  %v1090_v60 = vor.u32 %v1267_v55, %v1087_v57  ;;  %v1265_v61 = vld [vmem:[#allocation5 + $0x64] sm:$0xf]  ;;  %v1079_v62 = vld [vmem:[#allocation5 + $0x68] sm:$0xf0]  ;;  %v1149_v63 = vld [vmem:[#allocation5 + $0xf0] sm:$0xf] }
  0x2a   :  { %414 = vmatpush.bf16.msra.mxu2 %v938_v0  ;;  %428 = vmatpush.bf16.msra.mxu3 %v1002_v2  ;;  %v1078_v0 = vor.u32 %v1266_v59, %v1077_v58  ;;  %v1284_v1 = vld [vmem:[#allocation5 + $0xf4] sm:$0xf0]  ;;  %v1283_v2 = vld [vmem:[#allocation5 + $0xf4] sm:$0xf]  ;;  %v1151_v3 = vld [vmem:[#allocation5 + $0xf8] sm:$0xf0]  ;;  %v1082_v4 = vor.u32 %v1265_v61, %v1079_v62 }
  0x2b   :  { %388 = vmatpush.bf16.msra.mxu0 %v918_v18  ;;  %v1150_v5 = vor.u32 %v1284_v1, %v1149_v63  ;;  %v1154_v6 = vor.u32 %v1283_v2, %v1151_v3  ;;  %v1069_v7 = vld [vmem:[#allocation5 + $0x50] sm:$0xf]  ;;  %v1264_v8 = vld [vmem:[#allocation5 + $0x54] sm:$0xf0]  ;;  %v1263_v9 = vld [vmem:[#allocation5 + $0x54] sm:$0xf] }
  0x2c   :  { %403 = vmatpush.bf16.msra.mxu1 %v974_v34  ;;  %v1071_v10 = vld [vmem:[#allocation5 + $0x58] sm:$0xf0]  ;;  %v1141_v11 = vld [vmem:[#allocation5 + $0xe0] sm:$0xf]  ;;  %v1281_v16 = vld [vmem:[#allocation5 + $0xe4] sm:$0xf]  ;;  %v1070_v18 = vor.u32 %v1264_v8, %v1069_v7 }
  0x2d   :  { %v1143_v17 = vld [vmem:[#allocation5 + $0xe8] sm:$0xf0]  ;;  %v1074_v20 = vor.u32 %v1263_v9, %v1071_v10  ;;  %v1061_v21 = vld [vmem:[#allocation5 + $0x40] sm:$0xf]  ;;  %v1262_v22 = vld [vmem:[#allocation5 + $0x44] sm:$0xf0] }
  0x2e   :  { %415 = vmatpush.bf16.msra.mxu2 %v930_v12  ;;  %429 = vmatpush.bf16.msra.mxu3 %v994_v14  ;;  %v1282_v12 = vld [vmem:[#allocation5 + $0xe4] sm:$0xf0]  ;;  %v1146_v19 = vor.u32 %v1281_v16, %v1143_v17  ;;  %v1063_v24 = vld [vmem:[#allocation5 + $0x48] sm:$0xf0]  ;;  %v1062_v25 = vor.u32 %v1262_v22, %v1061_v21  ;;  %v169_v29 = vld [vmem:[%s1563_s4] sm:$0x3] }
  0x2f   :  { %389 = vmatpush.bf16.msra.mxu0 %v910_v30  ;;  %v1142_v15 = vor.u32 %v1282_v12, %v1141_v11  ;;  %v171_v31 = vperm.slane %v169_v29, 0  ;;  %v172_v33 = vperm.slane %v169_v29, 1  ;;  %v1133_v48 = vld [vmem:[#allocation5 + $0xd0] sm:$0xf]  ;;  %v1280_v49 = vld [vmem:[#allocation5 + $0xd4] sm:$0xf0] }
  0x30   :  { %404 = vmatpush.bf16.msra.mxu1 %v966_v46  ;;  %v1053_v54 = vld [vmem:[#allocation5 + $0x30] sm:$0xf]  ;;  %v1260_v55 = vld [vmem:[#allocation5 + $0x34] sm:$0xf0]  ;;  %v1055_v58 = vld [vmem:[#allocation5 + $0x38] sm:$0xf0] }
  0x31   :  { %v1054_v57 = vor.u32 %v1260_v55, %v1053_v54  ;;  %v1278_v61 = vld [vmem:[#allocation5 + $0xc4] sm:$0xf0]  ;;  %v1277_v62 = vld [vmem:[#allocation5 + $0xc4] sm:$0xf]  ;;  %v1045_v2 = vld [vmem:[#allocation5 + $0x20] sm:$0xf] }
  0x32   :  { %416 = vmatpush.bf16.msra.mxu2 %v922_v23  ;;  %430 = vmatpush.bf16.msra.mxu3 %v986_v26  ;;  %v1261_v23 = vld [vmem:[#allocation5 + $0x44] sm:$0xf]  ;;  %v1258_v3 = vld [vmem:[#allocation5 + $0x24] sm:$0xf0]  ;;  %v1117_v8 = vld [vmem:[#allocation5 + $0xb0] sm:$0xf] }
  0x33   :  { %390 = vmatpush.bf16.msra.mxu0 %v902_v42  ;;  %v1066_v26 = vor.u32 %v1261_v23, %v1063_v24  ;;  %v1276_v9 = vld [vmem:[#allocation5 + $0xb4] sm:$0xf0]  ;;  %v1275_v10 = vld [vmem:[#allocation5 + $0xb4] sm:$0xf]  ;;  %v1119_v12 = vld [vmem:[#allocation5 + $0xb8] sm:$0xf0] }
  0x34   :  { %657 = vmatpush.bf16.msrb.mxu1 %v1150_v5  ;;  %v1046_v5 = vor.u32 %v1258_v3, %v1045_v2  ;;  %v1118_v11 = vor.u32 %v1276_v9, %v1117_v8  ;;  %v1255_v16 = vld [vmem:[#allocation5 + $0x14] sm:$0xf]  ;;  %v1274_v21 = vld [vmem:[#allocation5 + $0xa4] sm:$0xf0]  ;;  %v1273_v22 = vld [vmem:[#allocation5 + $0xa4] sm:$0xf] }
  0x35   :  { %v1111_v24 = vld [vmem:[#allocation5 + $0xa8] sm:$0xf0]  ;;  %s873_s3 = sshll.u32 %s1570_s11, 4  ;;  %s874_s3 = int_to_ptr.hbm [resolvable:$true] %s873_s3 }
  0x36   :  { %417 = vmatpush.bf16.msra.mxu2 %v914_v35  ;;  %431 = vmatpush.bf16.msra.mxu3 %v978_v38  ;;  %v1299_v9 = vld [vmem:[%s1568_s9 + $0x70] sm:$0xff] }
  0x37   :  { %643 = vmatpush.bf16.msrb.mxu0 %v1086_v56  ;;  %v1259_v56 = vld [vmem:[#allocation5 + $0x34] sm:$0xf] }
  0x38   :  { %658 = vmatpush.bf16.msrb.mxu1 %v1142_v15  ;;  %v1058_v59 = vor.u32 %v1259_v56, %v1055_v58  ;;  %v1256_v15 = vld [vmem:[#allocation5 + $0x14] sm:$0xf0] }
  0x3a   :  { %418 = vmatpush.bf16.msra.mxu2 %v906_v47  ;;  %432 = vmatpush.bf16.msra.mxu3 %v970_v50  ;;  %v1279_v50 = vld [vmem:[#allocation5 + $0xd4] sm:$0xf] }
  0x3b   :  { %644 = vmatpush.bf16.msrb.mxu0 %v1078_v0  ;;  %v1127_v0 = vld [vmem:[#allocation5 + $0xc8] sm:$0xf0] }
  0x3c   :  { %v1130_v1 = vor.u32 %v1277_v62, %v1127_v0 }
  0x3e   :  { %671 = vmatpush.bf16.msrb.mxu2 %v1090_v60  ;;  %685 = vmatpush.bf16.msrb.mxu3 %v1154_v6  ;;  %v1125_v60 = vld [vmem:[#allocation5 + $0xc0] sm:$0xf]  ;;  %v1047_v6 = vld [vmem:[#allocation5 + $0x28] sm:$0xf0] }
  0x3f   :  { %645 = vmatpush.bf16.msrb.mxu0 %v1070_v18  ;;  %v1126_v63 = vor.u32 %v1278_v61, %v1125_v60  ;;  %v1039_v18 = vld [vmem:[#allocation5 + $0x18] sm:$0xf0] }
  0x42   :  { %672 = vmatpush.bf16.msrb.mxu2 %v1082_v4  ;;  %686 = vmatpush.bf16.msrb.mxu3 %v1146_v19  ;;  %v1257_v4 = vld [vmem:[#allocation5 + $0x24] sm:$0xf]  ;;  %v1042_v19 = vor.u32 %v1255_v16, %v1039_v18  ;;  %v1285_v18 = vld [vmem:[%s1568_s9] sm:$0xff] }
  0x43   :  { %646 = vmatpush.bf16.msrb.mxu0 %v1062_v25  ;;  %v1050_v7 = vor.u32 %v1257_v4, %v1047_v6  ;;  %v1114_v25 = vor.u32 %v1273_v22, %v1111_v24  ;;  %v1286_v16 = vld [vmem:[%s1568_s9 + $0x8] sm:$0xff]  ;;  %v477_v22 = vld [vmem:[%s1567_s8] sm:$0x3] }
  0x46   :  { %673 = vmatpush.bf16.msrb.mxu2 %v1074_v20  ;;  %v1109_v20 = vld [vmem:[#allocation5 + $0xa0] sm:$0xf] }
  0x47   :  { %647 = vmatpush.bf16.msrb.mxu0 %v1054_v57  ;;  %v1110_v23 = vor.u32 %v1274_v21, %v1109_v20  ;;  %v1293_v20 = vld [vmem:[%s1568_s9 + $0x40] sm:$0xff] }
  0x4a   :  { %674 = vmatpush.bf16.msrb.mxu2 %v1066_v26  ;;  %v1029_v26 = vld [vmem:[#allocation5] sm:$0xf] }
  0x4b   :  { %648 = vmatpush.bf16.msrb.mxu0 %v1046_v5 }
  0x4e   :  { %675 = vmatpush.bf16.msrb.mxu2 %v1058_v59 }
  0x52   :  { %676 = vmatpush.bf16.msrb.mxu2 %v1050_v7 }
  0x56   :  { %677 = vmatpush.bf16.msrb.mxu2 %v1042_v19  ;;  %v1294_v19 = vld [vmem:[%s1568_s9 + $0x48] sm:$0xff] }
  0x9c   :  { %v103_v51 = vpop.f32.mrf.mxu2  ;;  %v117_v52 = vpop.f32.mrf.mxu3 }
  0xa4   :  { %v105_v13 = vpop.f32.mrf.mxu2  ;;  %v119_v14 = vpop.f32.mrf.mxu3 }
  0xac   :  { %v150_v27 = vpop.f32.mrf.mxu2  ;;  %v164_v28 = vpop.f32.mrf.mxu3 }
  0xad   :  { %v151_v30 = vadd.f32 %v150_v27, %v103_v51  ;;  %v165_v32 = vadd.f32 %v164_v28, %v117_v52  ;;  %v1134_v51 = vor.u32 %v1280_v49, %v1133_v48  ;;  %v1135_v52 = vld [vmem:[#allocation5 + $0xd8] sm:$0xf0]  ;;  %v1254_v27 = vld [vmem:[#allocation5 + $0x4] sm:$0xf0]  ;;  %v1253_v28 = vld [vmem:[#allocation5 + $0x4] sm:$0xf] }
  0xae   :  { %v1138_v53 = vor.u32 %v1279_v50, %v1135_v52  ;;  %v1030_v29 = vor.u32 %v1254_v27, %v1029_v26  ;;  %v1290_v48 = vld [vmem:[%s1568_s9 + $0x28] sm:$0xff] }
  0xaf   :  { %v175_v36 = vadd.f32 %v171_v31, %v151_v30  ;;  %v176_v37 = vadd.f32 %v172_v33, %v165_v32  ;;  %659 = vmatpush.bf16.msrb.mxu1 %v1134_v51  ;;  %v1031_v30 = vld [vmem:[#allocation5 + $0x8] sm:$0xf0]  ;;  %v1101_v32 = vld [vmem:[#allocation5 + $0x90] sm:$0xf] }
  0xb0   :  { %687 = vmatpush.bf16.msrb.mxu3 %v1138_v53 }
  0xb1   :  { %v179_v42 = vmax.f32 %v175_v36, 0.0  ;;  %v180_v43 = vmax.f32 %v176_v37, 0.0  ;;  %v1103_v36 = vld [vmem:[#allocation5 + $0x98] sm:$0xf0] }
  0xb3   :  { %660 = vmatpush.bf16.msrb.mxu1 %v1126_v63 }
  0xb4   :  { %v152_v34 = vpop.f32.mrf.mxu2  ;;  %v166_v35 = vpop.f32.mrf.mxu3  ;;  %688 = vmatpush.bf16.msrb.mxu3 %v1130_v1 }
  0xb5   :  { %v153_v38 = vadd.f32 %v152_v34, %v105_v13  ;;  %v167_v39 = vadd.f32 %v166_v35, %v119_v14  ;;  %v1122_v13 = vor.u32 %v1275_v10, %v1119_v12  ;;  %v1037_v14 = vld [vmem:[#allocation5 + $0x10] sm:$0xf]  ;;  %v1271_v34 = vld [vmem:[#allocation5 + $0x94] sm:$0xf]  ;;  %v1289_v10 = vld [vmem:[%s1568_s9 + $0x20] sm:$0xff] }
  0xb6   :  { %v1038_v17 = vor.u32 %v1256_v15, %v1037_v14  ;;  %v1106_v37 = vor.u32 %v1271_v34, %v1103_v36  ;;  %v1288_v12 = vld [vmem:[%s1568_s9 + $0x18] sm:$0xff]  ;;  %v1287_v14 = vld [vmem:[%s1568_s9 + $0x10] sm:$0xff] }
  0xb7   :  { %v177_v40 = vadd.f32 %v171_v31, %v153_v38  ;;  %v178_v41 = vadd.f32 %v172_v33, %v167_v39  ;;  %661 = vmatpush.bf16.msrb.mxu1 %v1118_v11  ;;  %v1034_v31 = vor.u32 %v1253_v28, %v1031_v30  ;;  %v1272_v33 = vld [vmem:[#allocation5 + $0x94] sm:$0xf0]  ;;  %v1093_v38 = vld [vmem:[#allocation5 + $0x80] sm:$0xf]  ;;  %v1270_v39 = vld [vmem:[#allocation5 + $0x84] sm:$0xf0] }
  0xb8   :  { %689 = vmatpush.bf16.msrb.mxu3 %v1122_v13  ;;  %649 = vmatpush.bf16.msrb.mxu0 %v1038_v17  ;;  %v1102_v35 = vor.u32 %v1272_v33, %v1101_v32  ;;  %v1298_v11 = vld [vmem:[%s1568_s9 + $0x68] sm:$0xff]  ;;  %v1297_v13 = vld [vmem:[%s1568_s9 + $0x60] sm:$0xff]  ;;  %v1296_v15 = vld [vmem:[%s1568_s9 + $0x58] sm:$0xff]  ;;  %v480_v30 = vperm.slane %v477_v22, 1 }
  0xb9   :  { %v181_v44 = vmax.f32 %v177_v40, 0.0  ;;  %v182_v45 = vmax.f32 %v178_v41, 0.0  ;;  %678 = vmatpush.bf16.msrb.mxu2 %v1034_v31  ;;  %v1269_v40 = vld [vmem:[#allocation5 + $0x84] sm:$0xf]  ;;  %v1094_v41 = vor.u32 %v1270_v39, %v1093_v38  ;;  %v1295_v17 = vld [vmem:[%s1568_s9 + $0x50] sm:$0xff] }
  0xbb   :  { %v183_v46 = vpack.c.bf16 %v181_v44, %v179_v42  ;;  %v184_v47 = vpack.c.bf16 %v182_v45, %v180_v43  ;;  %662 = vmatpush.bf16.msrb.mxu1 %v1110_v23  ;;  %v1095_v42 = vld [vmem:[#allocation5 + $0x88] sm:$0xf0]  ;;  %v1292_v44 = vld [vmem:[%s1568_s9 + $0x38] sm:$0xff] }
  0xbc   :  { %690 = vmatpush.bf16.msrb.mxu3 %v1114_v25  ;;  %650 = vmatpush.bf16.msrb.mxu0 %v1030_v29  ;;  %v1098_v43 = vor.u32 %v1269_v40, %v1095_v42  ;;  %v1300_v45 = vld [vmem:[%s1568_s9 + $0x78] sm:$0xff]  ;;  %v479_v25 = vperm.slane %v477_v22, 0 }
  0xbd   :  { %391 = vmatmul.bf16.vlgmr.msra.gmra.mxu0 %v183_v46  ;;  %405 = vmatmul.bf16.vlgmr.msra.gmra.mxu1 %v184_v47 }
  0xbe   :  { %419 = vmatmul.bf16.vlgmr.msra.gmra.mxu2 %v183_v46  ;;  %433 = vmatmul.bf16.vlgmr.msra.gmra.mxu3 %v184_v47  ;;  %v1291_v46 = vld [vmem:[%s1568_s9 + $0x30] sm:$0xff]  ;;  %v217_v47 = vld [vmem:[%s1565_s6] sm:$0x3] }
  0xbf   :  { %663 = vmatpush.bf16.msrb.mxu1 %v1102_v35  ;;  %v219_v51 = vperm.slane %v217_v47, 0  ;;  %v220_v55 = vperm.slane %v217_v47, 1  ;;  %v1306_v47 = vld [vmem:[%s1569_s10] ss:$0 sm:$0xff] }
  0xc0   :  { %691 = vmatpush.bf16.msrb.mxu3 %v1106_v37  ;;  %837 = vmatpush.bf16.msra.mxu0 %v1292_v44 }
  0xc3   :  { %664 = vmatpush.bf16.msrb.mxu1 %v1094_v41 }
  0xc4   :  { %692 = vmatpush.bf16.msrb.mxu3 %v1098_v43  ;;  %838 = vmatpush.bf16.msra.mxu0 %v1291_v46 }
  0xc7   :  { %851 = vmatpush.bf16.msra.mxu1 %v1300_v45 }
  0xc8   :  { %839 = vmatpush.bf16.msra.mxu0 %v1290_v48 }
  0xcb   :  { %852 = vmatpush.bf16.msra.mxu1 %v1299_v9 }
  0xcc   :  { %840 = vmatpush.bf16.msra.mxu0 %v1289_v10 }
  0xcf   :  { %853 = vmatpush.bf16.msra.mxu1 %v1298_v11 }
  0xd0   :  { %841 = vmatpush.bf16.msra.mxu0 %v1288_v12 }
  0xd3   :  { %854 = vmatpush.bf16.msra.mxu1 %v1297_v13 }
  0xd4   :  { %842 = vmatpush.bf16.msra.mxu0 %v1287_v14 }
  0xd7   :  { %855 = vmatpush.bf16.msra.mxu1 %v1296_v15 }
  0xd8   :  { %843 = vmatpush.bf16.msra.mxu0 %v1286_v16 }
  0xdb   :  { %856 = vmatpush.bf16.msra.mxu1 %v1295_v17 }
  0xdc   :  { %844 = vmatpush.bf16.msra.mxu0 %v1285_v18 }
  0xdf   :  { %857 = vmatpush.bf16.msra.mxu1 %v1294_v19 }
  0xe3   :  { %858 = vmatpush.bf16.msra.mxu1 %v1293_v20 }
 0x13a   :  { %v392_v49 = vpop.f32.mrf.mxu0  ;;  %v406_v50 = vpop.f32.mrf.mxu1 }
 0x13b   :  { %v393_v52 = vadd.f32 %v392_v49, %v219_v51 }
 0x13d   :  { %v407_v57 = vadd.f32 %v406_v50, %v393_v52 }
 0x13f   :  { %v439_v62 = vmax.f32 %v407_v57, 0.0 }
 0x141   :  { %v420_v53 = vpop.f32.mrf.mxu2  ;;  %v434_v54 = vpop.f32.mrf.mxu3 }
 0x142   :  { %v394_v56 = vpop.f32.mrf.mxu0  ;;  %v408_v59 = vpop.f32.mrf.mxu1  ;;  %v421_v61 = vadd.f32 %v420_v53, %v220_v55 }
 0x143   :  { %v395_v58 = vadd.f32 %v394_v56, %v219_v51 }
 0x144   :  { %v435_v2 = vadd.f32 %v434_v54, %v421_v61 }
 0x145   :  { %v409_v60 = vadd.f32 %v408_v59, %v395_v58 }
 0x146   :  { %v440_v6 = vmax.f32 %v435_v2, 0.0 }
 0x147   :  { %v441_v63 = vmax.f32 %v409_v60, 0.0 }
 0x149   :  { %v443_v0 = vpack.c.bf16 %v441_v63, %v439_v62  ;;  %v422_v1 = vpop.f32.mrf.mxu2  ;;  %v436_v4 = vpop.f32.mrf.mxu3 }
 0x14a   :  { %v423_v3 = vadd.f32 %v422_v1, %v220_v55 }
 0x14b   :  { %651 = vmatmul.bf16.vlgmr.msrb.gmra.mxu0 %v443_v0  ;;  %679 = vmatmul.bf16.vlgmr.msrb.gmra.mxu2 %v443_v0 }
 0x14c   :  { %v437_v5 = vadd.f32 %v436_v4, %v423_v3 }
 0x14e   :  { %v442_v7 = vmax.f32 %v437_v5, 0.0 }
 0x150   :  { %v444_v8 = vpack.c.bf16 %v442_v7, %v440_v6 }
 0x152   :  { %665 = vmatmul.bf16.vlgmr.msrb.gmra.mxu1 %v444_v8  ;;  %693 = vmatmul.bf16.vlgmr.msrb.gmra.mxu3 %v444_v8 }
 0x1c8   :  { %v652_v21 = vpop.f32.mrf.mxu0 }
 0x1c9   :  { %v653_v27 = vadd.f32 %v652_v21, %v479_v25 }
 0x1ce   :  { %v680_v24 = vpop.f32.mrf.mxu2 }
 0x1cf   :  { %v666_v23 = vpop.f32.mrf.mxu1  ;;  %v681_v36 = vadd.f32 %v680_v24, %v480_v30 }
 0x1d0   :  { %v654_v26 = vpop.f32.mrf.mxu0  ;;  %v667_v29 = vadd.f32 %v666_v23, %v653_v27 }
 0x1d1   :  { %v655_v31 = vadd.f32 %v654_v26, %v479_v25 }
 0x1d2   :  { %v699_v35 = vmax.f32 %v667_v29, 0.0 }
 0x1d5   :  { %v694_v28 = vpop.f32.mrf.mxu3 }
 0x1d6   :  { %v682_v34 = vpop.f32.mrf.mxu2  ;;  %v695_v38 = vadd.f32 %v694_v28, %v681_v36 }
 0x1d7   :  { %v668_v32 = vpop.f32.mrf.mxu1  ;;  %v683_v40 = vadd.f32 %v682_v34, %v480_v30 }
 0x1d8   :  { %v669_v33 = vadd.f32 %v668_v32, %v655_v31  ;;  %v700_v43 = vmax.f32 %v695_v38, 0.0 }
 0x1da   :  { %v701_v37 = vmax.f32 %v669_v33, 0.0 }
 0x1dc   :  { %v703_v39 = vpack.c.bf16 %v701_v37, %v699_v35 }
 0x1dd   :  { %v696_v41 = vpop.f32.mrf.mxu3 }
 0x1de   :  { %v697_v42 = vadd.f32 %v696_v41, %v683_v40  ;;  %845 = vmatmul.bf16.vlgmr.msra.gmra.mxu0 %v703_v39 }
 0x1e0   :  { %v702_v44 = vmax.f32 %v697_v42, 0.0 }
 0x1e2   :  { %v704_v45 = vpack.c.bf16 %v702_v44, %v700_v43 }
 0x1e4   :  { %859 = vmatmul.bf16.vlgmr.msra.gmra.mxu1 %v704_v45 }
 0x25b   :  { %v846_v46 = vpop.f32.mrf.mxu0 }
 0x25c   :  { %v847_v48 = vadd.f32 %v1306_v47, %v846_v46 }
 0x261   :  { %v860_v49 = vpop.f32.mrf.mxu1 }
 0x262   :  { %v861_v50 = vadd.f32 %v860_v49, %v847_v48 }
 0x263   :  { %v848_v51 = vpop.f32.mrf.mxu0 }
 0x264   :  { %865 = vst.msk [vmem:[#allocation7] sm:$0xff] %vm130_vm3, %v861_v50  ;;  %v849_v52 = vadd.f32 %v1306_v47, %v848_v51 }
 0x269   :  { %v862_v53 = vpop.f32.mrf.mxu1 }
 0x26a   :  { %v863_v54 = vadd.f32 %v862_v53, %v849_v52 }
 0x26c   :  { %866 = vst.msk [vmem:[#allocation7 + $0x8] sm:$0xff] %vm130_vm3, %v863_v54 }
 0x26d   :  { %879 = dma.vmem_to_hbm [thread:$0]  %s872_s15, 256, %s874_s3, [#allocation4], %s1386_s25, %s1386_s25, %s1387_s26  }
 0x26e   :  { %1383 = dma.done.wait [#allocation4], 256  }
 0x26f   :  { %1384 = vsyncadd [#allocation4], 4294967040 }
 0x270   :  { %884 = vsyncpa [#allocation3], 1 }
 0x271   :  { %885 = vsyncpa [#allocation6], 1 }
 0x272   :  { %886 = vsyncpa [#allocation4], 1 }

</bundles_post_ra>
